<compile_context>
chip_gen: v6e
topology: v6e:2x2x1
jax: 0.10.0
libtpu: 0.0.40
codegen_flags: <defaults>
</compile_context>

<pallas_src>
import functools

import jax
import jax.numpy as jnp
import numpy as np
from jax.experimental import pallas as pl
from jax.experimental.pallas import tpu as pltpu

LANE = 128       # lane width (last dim)
SUBLANE = 8      # sublane width (second-to-last dim, f32)
TIME_CHUNK = 16  # timesteps per recurrence grid step (tuning knob, 16-32 is a
                 # good range; cap so 2 dirs x 2 buffers x chunk*B*4H gate
                 # tiles stay well inside VMEM on v7x)


# ----------------------------------------------------------------------------
# small helpers
# ----------------------------------------------------------------------------
def _round_up(x, m):
    return ((x + m - 1) // m) * m


def _pad_to(x, target_shape):
    pads = [(0, t - s) for s, t in zip(x.shape, target_shape)]
    return jnp.pad(x, pads)


def _row_tile(m):
    for t in (512, 256, 128, 64, 32, 16, 8):
        if m % t == 0:
            return t
    return m


def _col_tile(n, cap=512):
    t = min(n, cap)
    while n % t:
        t -= LANE
    return t


def _time_tile(t_pad):
    for t in (64, 32, 16, 8):
        if t_pad % t == 0:
            return t
    return t_pad


def _pad_inputs(tokens, lengths, time_chunk):
    t_len, b_len = tokens.shape
    t_pad = _round_up(t_len, time_chunk)
    b_pad = _round_up(max(b_len, 1), SUBLANE)
    tok = jnp.zeros((t_pad, b_pad), jnp.int32).at[:t_len, :b_len].set(
        tokens.astype(jnp.int32))
    lens = jnp.zeros((b_pad,), jnp.int32).at[:b_len].set(
        lengths.astype(jnp.int32))
    return tok, lens, t_pad, b_pad


# ----------------------------------------------------------------------------
# Pallas kernel 1: hoisted input projection for BOTH directions of one layer.
#   gates = sum_k x_k @ W_k + b   with W_k = [W_ih_fwd_k | W_ih_bwd_k] merged
# along N, so a single dot per input produces fwd gates (lanes [0:4H)) and
# bwd gates (lanes [4H:8H)).  Output is stored in bf16 (halves HBM traffic of
# the largest intermediate).  N is tiled by a second parallel grid axis so the
# weights stream through VMEM in bounded tiles.
# ----------------------------------------------------------------------------
def _gate_proj_kernel(*refs, n_in):
    xs = refs[:n_in]
    ws = refs[n_in:2 * n_in]
    b_ref, y_ref = refs[2 * n_in:]

    acc = b_ref[...]                                  # (1, tn) f32, broadcasts
    for x_ref, w_ref in zip(xs, ws):
        acc = acc + jnp.dot(x_ref[...], w_ref[...],
                            preferred_element_type=jnp.float32)
    y_ref[...] = acc.astype(y_ref.dtype)              # bf16 store


def gate_projection(xs, ws, bias):
    """xs: list of (M, K_i) bf16; ws: list of (K_i, N) bf16 (fwd|bwd merged);
    bias: (1, N) f32.  Returns (M, N) bf16 gate pre-activations."""
    n_in = len(xs)
    m = xs[0].shape[0]
    n = bias.shape[1]
    tm = _row_tile(m)
    tn = _col_tile(n)

    in_specs = ([pl.BlockSpec((tm, x.shape[1]), lambda r, c: (r, 0)) for x in xs]
                + [pl.BlockSpec((w.shape[0], tn), lambda r, c: (0, c)) for w in ws]
                + [pl.BlockSpec((1, tn), lambda r, c: (0, c))])
    out_spec = pl.BlockSpec((tm, tn), lambda r, c: (r, c))

    # TODO(synk): layer-0 embedding gather could be fused in here via scalar-
    # prefetch row gather (pl.Element) to avoid materializing x in HBM.
    return pl.pallas_call(
        functools.partial(_gate_proj_kernel, n_in=n_in),
        out_shape=jax.ShapeDtypeStruct((m, n), jnp.bfloat16),
        grid=(m // tm, n // tn),
        in_specs=in_specs,
        out_specs=out_spec,
        compiler_params=pltpu.CompilerParams(
            dimension_semantics=("parallel", "parallel")),
    )(*xs, *ws, bias)


# ----------------------------------------------------------------------------
# Pallas kernel 2: fused bidirectional LSTM recurrence, TIME_CHUNK steps per
# grid iteration.  Packed-sequence semantics: state only updates while
# t < length[b]; emitted hidden is zero for t >= length[b]; the backward
# direction walks time in reverse so each sequence effectively starts at its
# own last valid timestep with h = c = 0.
#
# The fwd/bwd interleave inside one sequential body fills MXU/EUP latency on
# single-TC chips (v5e/v6e).  On v7x a leading size-2 "direction" grid axis
# marked parallel would let the two TensorCores run the directions
# concurrently (kept single-body here for simplicity/portability).
# ----------------------------------------------------------------------------
def _bilstm_chunk_kernel(len_ref, xf_ref, xb_ref, whh_f_ref, whh_b_ref,
                         hf_out_ref, hb_out_ref,
                         hf_scr, cf_scr, hb_scr, cb_scr,
                         *, time_chunk, t_total, h_pad):
    s = pl.program_id(0)

    @pl.when(s == 0)
    def _():
        hf_scr[...] = jnp.zeros_like(hf_scr)
        cf_scr[...] = jnp.zeros_like(cf_scr)
        hb_scr[...] = jnp.zeros_like(hb_scr)
        cb_scr[...] = jnp.zeros_like(cb_scr)

    lens = len_ref[...]                               # (Bp, 1) int32

    def lstm_step(h, c, x_gates, whh_ref, t):
        # gates = (x@W_ih^T + b) [bf16 precomputed] + h@W_hh^T ; PyTorch gate
        # order i, f, g, o — each slice is lane-aligned (multiple of h_pad).
        gates = x_gates.astype(jnp.float32) + jnp.dot(
            h.astype(jnp.bfloat16), whh_ref[...],
            preferred_element_type=jnp.float32)
        i_g = jax.nn.sigmoid(gates[:, 0 * h_pad:1 * h_pad])
        f_g = jax.nn.sigmoid(gates[:, 1 * h_pad:2 * h_pad])
        g_g = jnp.tanh(gates[:, 2 * h_pad:3 * h_pad])
        o_g = jax.nn.sigmoid(gates[:, 3 * h_pad:4 * h_pad])
        c_new = f_g * c + i_g * g_g
        h_new = o_g * jnp.tanh(c_new)
        valid = lens > t                              # (Bp, 1) -> broadcasts
        h_keep = jnp.where(valid, h_new, h)
        c_keep = jnp.where(valid, c_new, c)
        emit = jnp.where(valid, h_new, jnp.zeros_like(h_new))
        return h_keep, c_keep, emit

    def body(i, carry):
        hf, cf, hb, cb = carry
        t_f = s * time_chunk + i                      # real time, forward
        t_b = t_total - 1 - t_f                       # real time, backward
        hf, cf, emit_f = lstm_step(hf, cf, xf_ref[i], whh_f_ref, t_f)
        hb, cb, emit_b = lstm_step(hb, cb, xb_ref[time_chunk - 1 - i],
                                   whh_b_ref, t_b)
        hf_out_ref[i] = emit_f.astype(hf_out_ref.dtype)
        hb_out_ref[time_chunk - 1 - i] = emit_b.astype(hb_out_ref.dtype)
        return hf, cf, hb, cb

    carry = (hf_scr[...], cf_scr[...], hb_scr[...], cb_scr[...])
    hf, cf, hb, cb = jax.lax.fori_loop(0, time_chunk, body, carry, unroll=True)
    hf_scr[...] = hf
    cf_scr[...] = cf
    hb_scr[...] = hb
    cb_scr[...] = cb


def bilstm_layer(gates, lens_col, whh_f, whh_b, *, h_pad, time_chunk):
    """gates: (T_pad, Bp, 8*h_pad) bf16 pre-activations (fwd | bwd halves).
    Returns (h_fwd, h_bwd), each (T_pad, Bp, h_pad) bf16, zeroed past lengths."""
    t_pad, b_pad, _ = gates.shape
    n4 = 4 * h_pad
    n_chunks = t_pad // time_chunk

    kernel = functools.partial(_bilstm_chunk_kernel, time_chunk=time_chunk,
                               t_total=t_pad, h_pad=h_pad)

    # W_hh / lengths blocks have constant index maps, so the pipeline fetches
    # them once; for very large H consider pipeline_mode=pl.Buffered(1) on
    # those specs and an explicit vmem_limit_bytes (v7x: 64 MiB physical).
    in_specs = [
        pl.BlockSpec((b_pad, 1), lambda s: (0, 0)),                      # lengths
        pl.BlockSpec((time_chunk, b_pad, n4), lambda s: (s, 0, 0)),      # fwd gates
        pl.BlockSpec((time_chunk, b_pad, n4),
                     lambda s: (n_chunks - 1 - s, 0, 1)),                # bwd gates
        pl.BlockSpec(whh_f.shape, lambda s: (0, 0)),                     # W_hh fwd
        pl.BlockSpec(whh_b.shape, lambda s: (0, 0)),                     # W_hh bwd
    ]
    out_specs = [
        pl.BlockSpec((time_chunk, b_pad, h_pad), lambda s: (s, 0, 0)),
        pl.BlockSpec((time_chunk, b_pad, h_pad),
                     lambda s: (n_chunks - 1 - s, 0, 0)),
    ]
    out_shape = [jax.ShapeDtypeStruct((t_pad, b_pad, h_pad), jnp.bfloat16)] * 2

    return pl.pallas_call(
        kernel,
        out_shape=out_shape,
        grid=(n_chunks,),
        in_specs=in_specs,
        out_specs=out_specs,
        scratch_shapes=[pltpu.VMEM((b_pad, h_pad), jnp.float32)] * 4,    # h_f,c_f,h_b,c_b
        compiler_params=pltpu.CompilerParams(
            dimension_semantics=("arbitrary",)),                         # sequential recurrence
    )(lens_col, gates, gates, whh_f, whh_b)


# ----------------------------------------------------------------------------
# Pallas kernel 3: final Linear with split weights (no 2H concat), vocab
# tiled on a second parallel grid axis, the pack/pad length mask fused into
# the store, and the batch-first layout produced directly by the kernel (no
# wrapper transpose over the largest tensor).
# ----------------------------------------------------------------------------
def _masked_linear_kernel(hf_ref, hb_ref, wf_ref, wb_ref, b_ref, m_ref, o_ref):
    tt, b_pad, hp = hf_ref.shape
    hf = hf_ref[...].reshape(tt * b_pad, hp)
    hb = hb_ref[...].reshape(tt * b_pad, hp)
    y = (b_ref[...]
         + jnp.dot(hf, wf_ref[...], preferred_element_type=jnp.float32)
         + jnp.dot(hb, wb_ref[...], preferred_element_type=jnp.float32))
    tv = y.shape[-1]
    y = y.reshape(tt, b_pad, tv) * m_ref[...][:, :, None]
    o_ref[...] = jnp.transpose(y, (1, 0, 2))          # (b_pad, tt, tv) store


def masked_linear_batchfirst(h_f, h_b, w_f, w_b, bias, mask):
    """h_f/h_b: (T_pad, Bp, h_pad) bf16; w_f/w_b: (h_pad, V_pad) bf16;
    bias: (1, V_pad) f32; mask: (T_pad, Bp) f32.
    Returns (Bp, T_pad, V_pad) f32 logits, zeroed past lengths."""
    t_pad, b_pad, hp = h_f.shape
    v = bias.shape[1]
    tt = _time_tile(t_pad)
    tv = _col_tile(v)
    return pl.pallas_call(
        _masked_linear_kernel,
        out_shape=jax.ShapeDtypeStruct((b_pad, t_pad, v), jnp.float32),
        grid=(t_pad // tt, v // tv),
        in_specs=[pl.BlockSpec((tt, b_pad, hp), lambda ti, vi: (ti, 0, 0)),
                  pl.BlockSpec((tt, b_pad, hp), lambda ti, vi: (ti, 0, 0)),
                  pl.BlockSpec((hp, tv), lambda ti, vi: (0, vi)),
                  pl.BlockSpec((hp, tv), lambda ti, vi: (0, vi)),
                  pl.BlockSpec((1, tv), lambda ti, vi: (0, vi)),
                  pl.BlockSpec((tt, b_pad), lambda ti, vi: (ti, 0))],
        out_specs=pl.BlockSpec((b_pad, tt, tv), lambda ti, vi: (0, ti, vi)),
        compiler_params=pltpu.CompilerParams(
            dimension_semantics=("parallel", "parallel")),
    )(h_f, h_b, w_f, w_b, bias, mask)


# ----------------------------------------------------------------------------
# Full model forward
# ----------------------------------------------------------------------------
def sequence_tagger_forward(prepared, src_tokens, src_lengths,
                            *, time_chunk=TIME_CHUNK):
    """src_tokens: (T, B) int32 time-major, src_lengths: (B,) int32.

    Returns (logits, lengths): logits is (B, T, tgt_vocab), batch-first, with
    positions t >= lengths[b] zeroed (the padded+masked equivalent of the
    PackedSequence the PyTorch module returns)."""
    t_len, b_len = src_tokens.shape
    tok, lens, t_pad, b_pad = _pad_inputs(src_tokens, src_lengths, time_chunk)
    hp, dp = prepared["h_pad"], prepared["in_pad"]
    v = prepared["tgt_vocab"]
    m_rows = t_pad * b_pad

    # Embedding lookup (gather glue; padding_idx row of the table is zero).
    x = prepared["emb"][tok]                           # (t_pad, b_pad, dp) bf16
    lens_col = lens.reshape(b_pad, 1)

    feats = [x.reshape(m_rows, dp)]
    for layer in prepared["lstm"]:
        # Hoisted input projection for both directions: one tall MXU matmul
        # per layer input, bf16 gate pre-activations written once to HBM.
        gates = gate_projection(feats, layer["w_in"], layer["bias"])
        hf, hb = bilstm_layer(gates.reshape(t_pad, b_pad, 8 * hp),
                              lens_col, layer["whh_f"], layer["whh_b"],
                              h_pad=hp, time_chunk=time_chunk)
        # Bidirectional "concat" is expressed as split/merged-weight matmuls
        # in the next projection / final linear; no (T, B, 2H) tensor built.
        feats = [hf.reshape(m_rows, hp), hb.reshape(m_rows, hp)]
        # TODO(synk): nn.Dropout / LSTM inter-layer dropout are train-only; identity in eval.

    # Final linear, batch-first output with the packed-sequence mask fused in.
    mask2d = (jnp.arange(t_pad)[:, None] < lens[None, :]).astype(jnp.float32)
    logits_bf = masked_linear_batchfirst(
        feats[0].reshape(t_pad, b_pad, hp), feats[1].reshape(t_pad, b_pad, hp),
        prepared["lin_wf"], prepared["lin_wb"], prepared["lin_b"], mask2d)
    return logits_bf[:b_len, :t_len, :v], src_lengths


# ----------------------------------------------------------------------------
# Parameters: PyTorch-shaped raw params -> padded / transposed kernel layouts
# ----------------------------------------------------------------------------
def init_raw_params(key, src_vocab, tgt_vocab, in_dim, h_dim, num_layers,
                    padding_idx=0):
    """Parameters with the same shapes as the nn.Module."""
    keys = iter(jax.random.split(key, 8 * num_layers + 8))
    scale = 0.1

    emb = scale * jax.random.normal(next(keys), (src_vocab, in_dim), jnp.float32)
    emb = emb.at[padding_idx].set(0.0)

    lstm = []
    for layer in range(num_layers):
        d_in = in_dim if layer == 0 else 2 * h_dim
        lp = {}
        for tag in ("f", "b"):
            lp[f"w_ih_{tag}"] = scale * jax.random.normal(
                next(keys), (4 * h_dim, d_in), jnp.float32)
            lp[f"w_hh_{tag}"] = scale * jax.random.normal(
                next(keys), (4 * h_dim, h_dim), jnp.float32)
            lp[f"b_ih_{tag}"] = scale * jax.random.normal(
                next(keys), (4 * h_dim,), jnp.float32)
            lp[f"b_hh_{tag}"] = scale * jax.random.normal(
                next(keys), (4 * h_dim,), jnp.float32)
        lstm.append(lp)

    lin_w = scale * jax.random.normal(next(keys), (tgt_vocab, 2 * h_dim), jnp.float32)
    lin_b = scale * jax.random.normal(next(keys), (tgt_vocab,), jnp.float32)
    return {"emb": emb, "lstm": lstm, "lin_w": lin_w, "lin_b": lin_b}


def prepare_params(raw, *, in_dim, h_dim, num_layers, tgt_vocab):
    """Pad (per gate) to 128-lane multiples, transpose, merge fwd/bwd input
    weights along N, and cast matmul operands to bf16 (biases in f32).  Zero
    padding keeps padded hidden units identically zero through the recurrence,
    so semantics match the unpadded module."""
    hp = _round_up(h_dim, LANE)
    dp = _round_up(in_dim, LANE)
    vp = _round_up(tgt_vocab, LANE)

    emb = _pad_to(raw["emb"], (raw["emb"].shape[0], dp)).astype(jnp.bfloat16)

    layers = []
    for li in range(num_layers):
        lr = raw["lstm"][li]
        layer = {}

        # merged input-projection weights: one (K_i, 8*hp) per layer input
        if li == 0:
            w_f = _pad_to(lr["w_ih_f"].reshape(4, h_dim, in_dim),
                          (4, hp, dp)).reshape(4 * hp, dp).T
            w_b = _pad_to(lr["w_ih_b"].reshape(4, h_dim, in_dim),
                          (4, hp, dp)).reshape(4 * hp, dp).T
            layer["w_in"] = [jnp.concatenate([w_f, w_b], axis=1)
                             .astype(jnp.bfloat16)]                     # (dp, 8hp)
        else:
            wfr = _pad_to(lr["w_ih_f"].reshape(4, h_dim, 2, h_dim), (4, hp, 2, hp))
            wbr = _pad_to(lr["w_ih_b"].reshape(4, h_dim, 2, h_dim), (4, hp, 2, hp))
            w_in = []
            for d in range(2):
                wf_d = wfr[:, :, d, :].reshape(4 * hp, hp).T            # (hp, 4hp)
                wb_d = wbr[:, :, d, :].reshape(4 * hp, hp).T
                w_in.append(jnp.concatenate([wf_d, wb_d], axis=1)
                            .astype(jnp.bfloat16))                      # (hp, 8hp)
            layer["w_in"] = w_in

        # recurrent weights and merged biases
        for tag in ("f", "b"):
            whh = _pad_to(lr[f"w_hh_{tag}"].reshape(4, h_dim, h_dim), (4, hp, hp))
            layer[f"whh_{tag}"] = whh.reshape(4 * hp, hp).T.astype(jnp.bfloat16)
        bias_f = _pad_to((lr["b_ih_f"] + lr["b_hh_f"]).reshape(4, h_dim),
                         (4, hp)).reshape(1, 4 * hp)
        bias_b = _pad_to((lr["b_ih_b"] + lr["b_hh_b"]).reshape(4, h_dim),
                         (4, hp)).reshape(1, 4 * hp)
        layer["bias"] = jnp.concatenate([bias_f, bias_b], axis=1).astype(jnp.float32)
        layers.append(layer)

    lin_w = _pad_to(raw["lin_w"].reshape(tgt_vocab, 2, h_dim), (vp, 2, hp))
    lin_wf = lin_w[:, 0, :].T.astype(jnp.bfloat16)                      # (hp, vp)
    lin_wb = lin_w[:, 1, :].T.astype(jnp.bfloat16)
    lin_b = _pad_to(raw["lin_b"], (vp,)).reshape(1, vp).astype(jnp.float32)

    return {"emb": emb, "lstm": layers, "lin_wf": lin_wf, "lin_wb": lin_wb,
            "lin_b": lin_b, "h_pad": hp, "in_pad": dp, "v_pad": vp,
            "h_dim": h_dim, "tgt_vocab": tgt_vocab}


# ----------------------------------------------------------------------------
# Pure-JAX reference (mirrors the kernel's dtype handling) for verification
# ----------------------------------------------------------------------------
def reference_forward(prepared, src_tokens, src_lengths, *, time_chunk=TIME_CHUNK):
    t_len, b_len = src_tokens.shape
    tok, lens, t_pad, b_pad = _pad_inputs(src_tokens, src_lengths, time_chunk)
    hp = prepared["h_pad"]
    v = prepared["tgt_vocab"]
    hi = jax.lax.Precision.HIGHEST

    x = prepared["emb"][tok].astype(jnp.float32)
    feats = [x]
    lens_col = lens.reshape(b_pad, 1)

    for layer in prepared["lstm"]:
        y = jnp.zeros((t_pad, b_pad, 8 * hp), jnp.float32) + layer["bias"]
        for f_in, w in zip(feats, layer["w_in"]):
            y = y + jnp.einsum("tbk,kn->tbn", f_in, w.astype(jnp.float32),
                               precision=hi)
        y = y.astype(jnp.bfloat16).astype(jnp.float32)   # bf16 gate store
        xf, xb = y[..., :4 * hp], y[..., 4 * hp:]

        def run_direction(xp, whh, reverse):
            w32 = whh.astype(jnp.float32)

            def step(carry, inp):
                h, c = carry
                xg, t = inp
                gates = xg + jnp.dot(h.astype(jnp.bfloat16).astype(jnp.float32),
                                     w32, precision=hi)
                i_g = jax.nn.sigmoid(gates[:, 0 * hp:1 * hp])
                f_g = jax.nn.sigmoid(gates[:, 1 * hp:2 * hp])
                g_g = jnp.tanh(gates[:, 2 * hp:3 * hp])
                o_g = jax.nn.sigmoid(gates[:, 3 * hp:4 * hp])
                c_new = f_g * c + i_g * g_g
                h_new = o_g * jnp.tanh(c_new)
                valid = lens_col > t
                return ((jnp.where(valid, h_new, h), jnp.where(valid, c_new, c)),
                        jnp.where(valid, h_new, 0.0))

            ts = jnp.arange(t_pad, dtype=jnp.int32)
            xs = (xp[::-1], ts[::-1]) if reverse else (xp, ts)
            init = (jnp.zeros((b_pad, hp), jnp.float32),
                    jnp.zeros((b_pad, hp), jnp.float32))
            _, out = jax.lax.scan(step, init, xs)
            return out[::-1] if reverse else out

        hf = run_direction(xf, layer["whh_f"], reverse=False)
        hb = run_direction(xb, layer["whh_b"], reverse=True)
        feats = [hf.astype(jnp.bfloat16).astype(jnp.float32),
                 hb.astype(jnp.bfloat16).astype(jnp.float32)]

    logits = (prepared["lin_b"]
              + jnp.einsum("tbk,kv->tbv", feats[0],
                           prepared["lin_wf"].astype(jnp.float32), precision=hi)
              + jnp.einsum("tbk,kv->tbv", feats[1],
                           prepared["lin_wb"].astype(jnp.float32), precision=hi))
    mask = (jnp.arange(t_pad)[:, None] < lens[None, :]).astype(jnp.float32)
    logits = logits * mask[:, :, None]
    return jnp.transpose(logits[:t_len, :b_len, :v], (1, 0, 2))


if __name__ == "__main__":
    SRC_VOCAB, TGT_VOCAB = 20, 10
    IN_DIM, H_DIM, NUM_LAYERS = 16, 32, 2
    T, B = 24, 2            # T=24 with TIME_CHUNK=16 exercises the multi-chunk path

    key = jax.random.PRNGKey(0)
    pkey, tkey = jax.random.split(key)

    raw = init_raw_params(pkey, SRC_VOCAB, TGT_VOCAB, IN_DIM, H_DIM, NUM_LAYERS)
    params = prepare_params(raw, in_dim=IN_DIM, h_dim=H_DIM,
                            num_layers=NUM_LAYERS, tgt_vocab=TGT_VOCAB)

    src_lengths = jnp.array([24, 17], dtype=jnp.int32)     # per-sequence lengths
    src_tokens = jax.random.randint(tkey, (T, B), 1, SRC_VOCAB, dtype=jnp.int32)
    pad_mask = jnp.arange(T)[:, None] < src_lengths[None, :]
    src_tokens = jnp.where(pad_mask, src_tokens, 0)         # padding_idx = 0

    logits, lengths = sequence_tagger_forward(params, src_tokens, src_lengths)
    jax.block_until_ready(logits)
    assert logits.shape == (B, T, TGT_VOCAB)

    ref = reference_forward(params, src_tokens, src_lengths)
    np.testing.assert_allclose(np.asarray(logits), np.asarray(ref),
                               rtol=2e-2, atol=2e-2)
    print("KERNEL_OK")
</pallas_src>

<mosaic_0001>
module attributes {stable_mosaic.version = 11 : i64} {
  func.func @_gate_proj_kernel(%arg0: i32, %arg1: i32, %arg2: memref<256x128xbf16, #tpu.memory_space<vmem>>, %arg3: memref<128x512xbf16, #tpu.memory_space<vmem>>, %arg4: memref<1x512xf32, #tpu.memory_space<vmem>>, %arg5: memref<256x512xbf16, #tpu.memory_space<vmem>>) attributes {dimension_semantics = [#tpu.dimension_semantics<parallel>, #tpu.dimension_semantics<parallel>], iteration_bounds = array<i64: 1, 2>, scalar_prefetch = 0 : i64, scratch_operands = 0 : i64, tpu.core_type = #tpu.core_type<tc>, window_params = [{transform_indices = @transform_0, window_bounds = array<i64: 256, 128>}, {transform_indices = @transform_1, window_bounds = array<i64: 128, 512>}, {transform_indices = @transform_2, window_bounds = array<i64: 1, 512>}, {transform_indices = @transform_3, window_bounds = array<i64: 256, 512>}]} {
    %c0 = arith.constant 0 : index
    %c0_0 = arith.constant 0 : index
    %0 = vector.load %arg4[%c0, %c0_0] : memref<1x512xf32, #tpu.memory_space<vmem>>, vector<1x512xf32>
    %c0_1 = arith.constant 0 : index
    %c0_2 = arith.constant 0 : index
    %1 = vector.load %arg2[%c0_1, %c0_2] : memref<256x128xbf16, #tpu.memory_space<vmem>>, vector<256x128xbf16>
    %c0_3 = arith.constant 0 : index
    %c0_4 = arith.constant 0 : index
    %2 = vector.load %arg3[%c0_3, %c0_4] : memref<128x512xbf16, #tpu.memory_space<vmem>>, vector<128x512xbf16>
    %cst = arith.constant dense<0.000000e+00> : vector<256x512xf32>
    %3 = tpu.matmul %1, %2, %cst {dimension_numbers = #tpu.dot_dimension_numbers<[1], [0], [0], [1], [0, 0, 1, 1], [], []>} : vector<256x128xbf16>, vector<128x512xbf16>, vector<256x512xf32> -> vector<256x512xf32>
    %4 = vector.broadcast %0 : vector<1x512xf32> to vector<256x512xf32>
    %5 = arith.addf %4, %3 : vector<256x512xf32>
    %6 = arith.truncf %5 : vector<256x512xf32> to vector<256x512xbf16>
    %c0_5 = arith.constant 0 : index
    %c0_6 = arith.constant 0 : index
    %7 = vector.load %arg5[%c0_5, %c0_6] : memref<256x512xbf16, #tpu.memory_space<vmem>>, vector<256x512xbf16>
    tpu.vector_store %arg5[%c0_5, %c0_6], %6 {strides = array<i32>} : memref<256x512xbf16, #tpu.memory_space<vmem>>, vector<256x512xbf16>,
    return
  }
  func.func @transform_0(%arg0: i32, %arg1: i32) -> (i32, i32) {
    %c0_i32 = arith.constant 0 : i32
    %c0_i32_0 = arith.constant 0 : i32
    return %arg0, %c0_i32 : i32, i32
  }
  func.func @transform_1(%arg0: i32, %arg1: i32) -> (i32, i32) {
    %c0_i32 = arith.constant 0 : i32
    %c0_i32_0 = arith.constant 0 : i32
    return %c0_i32, %arg1 : i32, i32
  }
  func.func @transform_2(%arg0: i32, %arg1: i32) -> (i32, i32) {
    %c0_i32 = arith.constant 0 : i32
    %c0_i32_0 = arith.constant 0 : i32
    return %c0_i32, %arg1 : i32, i32
  }
  func.func @transform_3(%arg0: i32, %arg1: i32) -> (i32, i32) {
    %c0_i32 = arith.constant 0 : i32
    return %arg0, %arg1 : i32, i32
  }
}

</mosaic_0001>

<bundles_post_ra>
// kernel: tpu_custom_call.1
= control target key start
LH: loop header
LB: loop body
LE: loop exit
PB: predicated region body
PF: predicated region fallthrough
CT: control target
= control target key end

     0   :  { %8 = vsyncpa [#allocation3], 0  ;;  %s2728_s0 = inlined_call_operand.hbm [shape: bf16[256,128], index: 0, kind: input, shape index: {}]   ;;  %s2729_s1 = inlined_call_operand.hbm [shape: bf16[128,1024], index: 1, kind: input, shape index: {}]   ;;  %s2730_s2 = inlined_call_operand.hbm [shape: f32[1,1024], index: 2, kind: input, shape index: {}]   ;;  %s2731_s3 = inlined_call_operand.hbm [shape: bf16[256,1024], index: 3, kind: output, shape index: {}]  }
   0x1   :  { %9 = vsyncpa [#allocation6], 0 }
   0x2   :  { %11 = vsyncpa [#allocation6 + $0x1], 0 }
   0x3   :  { %12 = vsyncpa [#allocation4], 0 }
   0x4   :  { %14 = vsyncpa [#allocation4 + $0x1], 0  ;;  %s2258_s12 = smov 0   ;;  %s2260_s13 = smov 0  }
   0x5   :  { %s2262_s14 = smov 0   ;;  %s2264_s15 = smov 0  }
   0x6   :  { %s2266_s16 = smov 0   ;;  %s2268_s17 = smov 0  }
   0x7 LB: > { %s29_s18 = sadd.s32 1, %s2219_s16  ;;  %s65_s19 = sadd.s32 1, %s2211_s14  ;;  %s2223_s17 = sphi %s2268_s17, %s20_s17   ;;  %s2219_s16 = sphi %s2266_s16, %s2751_s16   ;;  %s2215_s15 = sphi %s2264_s15, %s2750_s15   ;;  %s2211_s14 = sphi %s2262_s14, %s2749_s14   ;;  %s2207_s13 = sphi %s2260_s13, %s2748_s13   ;;  %s2203_s12 = sphi %s2258_s12, %s2747_s12  }
   0x8   : > { %p30_p0 = scmp.ge.s32.totalorder %s29_s18, 2  ;;  %p72_p1 = scmp.ne.s32.totalorder %s2211_s14, %s2207_s13 }
   0x9   : > { %p73_p2 = scmp.eq.s32.totalorder %s2223_s17, 0  ;;  %p1932_p5 = scmp.lt.s32.totalorder %s2223_s17, 2 }
   0xa   : > { %s2753_s18 = smov (%p30_p0, %s29_s18), 0  ;;  %s172_s21 = sand.u32 1, %s2223_s17  }
   0xb   : > { %p74_p4 = por %p73_p2, %p72_p1  ;;  %s62_s20 = ssub.s32 %s2219_s16, %s2753_s18 }
   0xc   : > { %p63_p6 = scmp.eq.s32.totalorder %s62_s20, 0  ;;  %s174_s22 = sand.u32 1, %s2211_s14  }
   0xd   : > { %s1839_s23 = sshll.u32 %s2219_s16, 8  ;;  %s1711_s25 = sshll.u32 %s174_s22, 8 }
   0xe   : > { %s2306_s24 = scalar_select %p63_p6, %s2211_s14, %s65_s19  }
   0xf   : > { %s182_s28 = scalar_lea.hbm %s2729_s1, %s1839_s23  ;;  %p2313_p7 = pnand %p1932_p5, %p74_p4 }
  0x10   : > { %s176_s30 = scalar_lea.vmem [#allocation5], %s1711_s25  ;;  %s2317_s5 = scalar_lea.sflag [#allocation6], %s172_s21 }
  0x11   : > { %s183_s4 = sshll.u32 %s176_s30, 4  ;;  %p2733_p8 = pneg %p2313_p7  ;;  %s184_s4 = int_to_ptr.vmem [resolvable:$true] %s183_s4 }
  0x12   : > { %s2070_s6 = scalar_lea.vmem %s184_s4, 4096  ;;  %s2225_s7 = smov [#allocation5]  }
  0x13   : > { %p2071_p9 = scmp.ne.s32.totalorder %s184_s4, %s2070_s6  ;;  %s2075_s8 = sshll.u32 %s2225_s7, 4  ;;  %s2076_s8 = int_to_ptr.vmem [resolvable:$false] %s2075_s8 }
  0x14   : > { %s2077_s9 = scalar_lea.vmem %s2076_s8, 8192  ;;  %p2078_p12 = scmp.lt.s32.totalorder %s184_s4, %s2076_s8 }
  0x15   : > { %p2073_p10 = pnand %p2071_p9, %p2733_p8  ;;  %p2079_p13 = scmp.lt.s32.totalorder %s2077_s9, %s2070_s6 }
  0x17   : > { %p2074_p11 = pneg %p2073_p10  ;;  %p2080_p0 = por %p2079_p13, %p2078_p12 }
  0x19   : > { %p2081_p2 = pnand %p2080_p0, %p2074_p11 }
  0x1b   : > { %2084 = shalt.err (!%p2081_p2)
}
  0x1c   : > { %s2226_s10 = smov 512   ;;  %s2227_s11 = smov 256  }
  0x1d   : > { %s2228_s19 = smov 16   ;;  %s2328_s20 = sadd.s32 4294967295, %s2223_s17  }
  0x1e   : > { %1923 = dma.hbm_to_vmem [thread:$0]  (!%p2313_p7), %s182_s28, 4096, %s184_s4, %s2317_s5, %s2226_s10, %s2227_s11, %s2228_s19  }
  0x1f   : > { %s1707_s21 = sadd.s32 4294967294, %s2223_s17   ;;  %p78_p4 = scmp.ne.s32.totalorder %s2207_s13, %s2203_s12 }
  0x20   : > { %p2732_p5 = scmp.eq.s32.totalorder %s2328_s20, 0  ;;  %p130_p6 = scmp.eq.s32.totalorder %s2328_s20, 1 }
  0x21   : > { %p136_p9 = scmp.eq.s32.totalorder %s1707_s21, 1  ;;  %p1708_p11 = scmp.ge.s32.totalorder %s2223_s17, 1 }
  0x22   : > { %p2337_p10 = por %p2732_p5, %p78_p4  ;;  %p2345_p12 = por %p130_p6, %p72_p1 }
  0x23   : > { %p2349_p13 = por %p136_p9, %p78_p4  ;;  %p143_p0 = scmp.lt.s32.totalorder %s2223_s17, 3 }
  0x24   : > { %s2737_s25 = scalar_select %p2345_p12, 1, 0 }
  0x25   : > { %s2738_s26 = scalar_select %p2349_p13, 1, 0 }
  0x26   : > { %p2354_p2 = pnand %p1708_p11, %p143_p0  ;;  %s2229_s28 = smov [#allocation2]  }
  0x27   : > { %s158_s30 = sshll.u32 %s2229_s28, 4  ;;  %s1714_s4 = sshll.u32 %s174_s22, 2  ;;  %s159_s30 = int_to_ptr.vmem [resolvable:$true] %s158_s30 }
  0x28   : > { %p1916_p3 = pneg %p2354_p2  ;;  %s1840_s6 = sshll.u32 %s2219_s16, 6 }
  0x29   : > { %s2372_s10 = scalar_lea.hbm %s2730_s2, %s1840_s6  ;;  %s197_s11 = scalar_lea.vmem [#allocation7], %s1714_s4 }
  0x2a   : > { %p2365_p1 = pnand %p1916_p3, %p2732_p5  ;;  %s205_s19 = sshll.u32 %s197_s11, 4  ;;  %s206_s19 = int_to_ptr.vmem [resolvable:$true] %s205_s19 }
  0x2b   : > { %s2096_s21 = scalar_lea.vmem %s159_s30, 2048  ;;  %p2104_p0 = scmp.lt.s32.totalorder %s159_s30, %s159_s30 }
  0x2c   : > { %p2087_p4 = pneg %p2365_p1  ;;  %p2097_p6 = scmp.ne.s32.totalorder %s159_s30, %s2096_s21 }
  0x2d   : > { %p2105_p3 = scmp.lt.s32.totalorder %s2096_s21, %s2096_s21 }
  0x2e   : > { %p2099_p9 = pnand %p2097_p6, %p2087_p4 }
  0x2f   : > { %p2106_p5 = por %p2105_p3, %p2104_p0 }
  0x30   : > { %p2100_p11 = pneg %p2099_p9 }
  0x32   : > { %p2107_p8 = pnand %p2106_p5, %p2100_p11 }
  0x34   : > { %2110 = shalt.err (!%p2107_p8)
}
  0x35   : > { %s2230_s22 = smov 64   ;;  %s2231_s28 = smov 4  }
  0x36   : > { %1919 = dma.hbm_to_vmem [thread:$0]  (!%p2365_p1), %s2728_s0, 2048, %s159_s30, [#allocation3], %s2230_s22, %s2230_s22, %s2231_s28  }
  0x37   : > { %s2124_s8 = scalar_lea.vmem %s206_s19, 64  ;;  %p2741_p12 = pneg %p2313_p7 }
  0x38   : > { %p2125_p13 = scmp.ne.s32.totalorder %s206_s19, %s2124_s8  ;;  %s2232_s9 = smov [#allocation7]  }
  0x39   : > { %s2129_s11 = sshll.u32 %s2232_s9, 4  ;;  %s2130_s11 = int_to_ptr.vmem [resolvable:$false] %s2129_s11 }
  0x3a   : > { %p2127_p4 = pnand %p2125_p13, %p2741_p12  ;;  %s2131_s21 = scalar_lea.vmem %s2130_s11, 128 }
  0x3b   : > { %p2132_p8 = scmp.lt.s32.totalorder %s206_s19, %s2130_s11  ;;  %p2133_p5 = scmp.lt.s32.totalorder %s2131_s21, %s2124_s8 }
  0x3c   : > { %p2128_p6 = pneg %p2127_p4 }
  0x3d   : > { %p2134_p9 = por %p2133_p5, %p2132_p8 }
  0x3f   : > { %p2135_p11 = pnand %p2134_p9, %p2128_p6 }
  0x41   : > { %2138 = shalt.err (!%p2135_p11)
}
  0x42   : > { %1926 = dma.hbm_to_vmem [thread:$0]  (!%p2313_p7), %s2372_s10, 64, %s206_s19, %s2317_s5  }
  0x43   : > { %214 = sbr.rel (%p2354_p2) target bundleno = 449 (0x1c1), region = 32  ;;  %p2742_p12 = scmp.eq.s32.totalorder (!%p2354_p2), %s2328_s20, 0 }
  0x48   : > { %2190 = dma.done.wait (%p2742_p12), [#allocation3], 2048   ;;  %p2743_p13 = pmov %p2742_p12 }
  0x49   : > { %s220_s30 = sand.u32 1, %s2328_s20   ;;  %s2396_s7 = sand.u32 1, %s2207_s13  }
  0x4a   : > { %2192 = vsyncadd (%p2743_p13), [#allocation3], 4294965248  ;;  %s1719_s29 = sshll.u32 %s2396_s7, 8  ;;  %s221_s22 = scalar_lea.sflag [#allocation6], %s220_s30 }
  0x4b   : > { %s2399_s28 = scalar_lea.vmem [#allocation5], %s1719_s29 }
  0x4c   : > { %2194 = dma.done.wait (%p2337_p10), %s221_s22, 4160  }
  0x4d   : > { %2196 = vsyncadd (%p2337_p10), %s221_s22, 4294963136  ;;  %v2233_v0 = vmov 0   ;;  %v1993_v1 = vld [vmem:[%s2399_s28 + $0xe4] ss:$16 sps:$4 sm:$0xff]   ;;  %v1995_v2 = vld [vmem:[%s2399_s28 + $0xec] ss:$16 sps:$4 sm:$0xff]   ;;  %v975_v49 = vlaneseq }
  0x4e   : > { %620 = vmatprep.mubr.bf16.mxu0 %v2233_v0  ;;  %813 = vmatprep.mubr.bf16.mxu1 %v2233_v0  ;;  %v1997_v3 = vld [vmem:[%s2399_s28 + $0xe0] ss:$16 sps:$4 sm:$0xff]   ;;  %v1998_v4 = vld [vmem:[%s2399_s28 + $0xe8] ss:$16 sps:$4 sm:$0xff]   ;;  %v1999_v5 = vld [vmem:[%s2399_s28 + $0xc4] ss:$16 sps:$4 sm:$0xff]  }
  0x4f   : > { %588 = vmatprep.subr.bf16.mxu0 %v1993_v1  ;;  %781 = vmatprep.subr.bf16.mxu1 %v1995_v2  ;;  %v2001_v6 = vld [vmem:[%s2399_s28 + $0xcc] ss:$16 sps:$4 sm:$0xff]   ;;  %v2003_v7 = vld [vmem:[%s2399_s28 + $0xc0] ss:$16 sps:$4 sm:$0xff]   ;;  %v2004_v8 = vld [vmem:[%s2399_s28 + $0xc8] ss:$16 sps:$4 sm:$0xff]  }
  0x50   : > { %589 = vmatpush1.bf16.msra.mxu0 %v1997_v3  ;;  %782 = vmatpush1.bf16.msra.mxu1 %v1998_v4  ;;  %v2005_v9 = vld [vmem:[%s2399_s28 + $0xa4] ss:$16 sps:$4 sm:$0xff]   ;;  %v2007_v10 = vld [vmem:[%s2399_s28 + $0xac] ss:$16 sps:$4 sm:$0xff]   ;;  %v2009_v11 = vld [vmem:[%s2399_s28 + $0xa0] ss:$16 sps:$4 sm:$0xff]  }
  0x51   : > { %590 = vmatprep.subr.bf16.mxu0 %v1999_v5  ;;  %783 = vmatprep.subr.bf16.mxu1 %v2001_v6  ;;  %v2010_v12 = vld [vmem:[%s2399_s28 + $0xa8] ss:$16 sps:$4 sm:$0xff]   ;;  %v2011_v13 = vld [vmem:[%s2399_s28 + $0x84] ss:$16 sps:$4 sm:$0xff]   ;;  %v2013_v14 = vld [vmem:[%s2399_s28 + $0x8c] ss:$16 sps:$4 sm:$0xff]  }
  0x52   : > { %v2015_v15 = vld [vmem:[%s2399_s28 + $0x80] ss:$16 sps:$4 sm:$0xff]   ;;  %v2016_v16 = vld [vmem:[%s2399_s28 + $0x88] ss:$16 sps:$4 sm:$0xff]   ;;  %v2017_v17 = vld [vmem:[%s2399_s28 + $0x64] ss:$16 sps:$4 sm:$0xff]  }
  0x53   : > { %v2019_v18 = vld [vmem:[%s2399_s28 + $0x6c] ss:$16 sps:$4 sm:$0xff]   ;;  %v2021_v19 = vld [vmem:[%s2399_s28 + $0x60] ss:$16 sps:$4 sm:$0xff]   ;;  %v2022_v20 = vld [vmem:[%s2399_s28 + $0x68] ss:$16 sps:$4 sm:$0xff]  }
  0x54   : > { %591 = vmatpush1.bf16.msra.mxu0 %v2003_v7  ;;  %784 = vmatpush1.bf16.msra.mxu1 %v2004_v8  ;;  %v2023_v21 = vld [vmem:[%s2399_s28 + $0x44] ss:$16 sps:$4 sm:$0xff]   ;;  %v2025_v22 = vld [vmem:[%s2399_s28 + $0x4c] ss:$16 sps:$4 sm:$0xff]   ;;  %v2027_v23 = vld [vmem:[%s2399_s28 + $0x40] ss:$16 sps:$4 sm:$0xff]  }
  0x55   : > { %592 = vmatprep.subr.bf16.mxu0 %v2005_v9  ;;  %785 = vmatprep.subr.bf16.mxu1 %v2007_v10  ;;  %v2028_v24 = vld [vmem:[%s2399_s28 + $0x48] ss:$16 sps:$4 sm:$0xff]   ;;  %v2029_v25 = vld [vmem:[%s2399_s28 + $0x24] ss:$16 sps:$4 sm:$0xff]   ;;  %v2031_v26 = vld [vmem:[%s2399_s28 + $0x2c] ss:$16 sps:$4 sm:$0xff]  }
  0x56   : > { %v2033_v27 = vld [vmem:[%s2399_s28 + $0x20] ss:$16 sps:$4 sm:$0xff]   ;;  %v2034_v28 = vld [vmem:[%s2399_s28 + $0x28] ss:$16 sps:$4 sm:$0xff]   ;;  %v2035_v29 = vld [vmem:[%s2399_s28 + $0x4] ss:$16 sps:$4 sm:$0xff]  }
  0x57   : > { %v2037_v30 = vld [vmem:[%s2399_s28 + $0xc] ss:$16 sps:$4 sm:$0xff]   ;;  %v2039_v31 = vld [vmem:[%s2399_s28] ss:$16 sps:$4 sm:$0xff]   ;;  %v2040_v32 = vld [vmem:[%s2399_s28 + $0x8] ss:$16 sps:$4 sm:$0xff]  }
  0x58   : > { %593 = vmatpush1.bf16.msra.mxu0 %v2009_v11  ;;  %786 = vmatpush1.bf16.msra.mxu1 %v2010_v12  ;;  %v2041_v33 = vld [vmem:[#allocation2] sm:$0xff]   ;;  %v2042_v34 = vld [vmem:[#allocation2 + $0x8] sm:$0xff]   ;;  %v2043_v35 = vld [vmem:[#allocation2 + $0x10] sm:$0xff]   ;;  %s1720_s5 = sshll.u32 %s2396_s7, 2  ;;  %v976_v50 = vshrl.u32 %v975_v49, 7  ;;  %s1721_s23 = sshll.u32 %s2396_s7, 9 }
  0x59   : > { %594 = vmatprep.subr.bf16.mxu0 %v2011_v13  ;;  %787 = vmatprep.subr.bf16.mxu1 %v2013_v14  ;;  %v2044_v36 = vld [vmem:[#allocation2 + $0x18] sm:$0xff]   ;;  %v2045_v37 = vld [vmem:[#allocation2 + $0x20] sm:$0xff]   ;;  %v2046_v38 = vld [vmem:[#allocation2 + $0x28] sm:$0xff]   ;;  %s233_s20 = scalar_lea.vmem [#allocation7], %s1720_s5  ;;  %s2483_s27 = scalar_lea.vmem [#allocation8], %s1721_s23 }
  0x5a   : > { %v2047_v39 = vld [vmem:[#allocation2 + $0x30] sm:$0xff]   ;;  %v2048_v40 = vld [vmem:[#allocation2 + $0x38] sm:$0xff]   ;;  %v2049_v41 = vld [vmem:[#allocation2 + $0x40] sm:$0xff]   ;;  %v977_v51 = vsub.s32 0, %v976_v50  ;;  %v985_v52 = vsub.s32 2, %v976_v50  ;;  %v981_v53 = vsub.s32 1, %v976_v50 }
  0x5b   : > { %v2050_v42 = vld [vmem:[#allocation2 + $0x48] sm:$0xff]   ;;  %v2051_v43 = vld [vmem:[#allocation2 + $0x50] sm:$0xff]   ;;  %v2052_v44 = vld [vmem:[#allocation2 + $0x58] sm:$0xff]   ;;  %v989_v54 = vsub.s32 3, %v976_v50  ;;  %s1905_s10 = sshll.u32 %s2215_s15, 8  ;;  %s1588_s19 = sshll.u32 %s2483_s27, 4  ;;  %s2678_s19 = int_to_ptr.vmem [resolvable:$true] %s1588_s19 }
  0x5c   : > { %595 = vmatpush1.bf16.msra.mxu0 %v2015_v15  ;;  %788 = vmatpush1.bf16.msra.mxu1 %v2016_v16  ;;  %v2053_v45 = vld [vmem:[#allocation2 + $0x60] sm:$0xff]   ;;  %v2054_v46 = vld [vmem:[#allocation2 + $0x68] sm:$0xff]   ;;  %v2055_v47 = vld [vmem:[#allocation2 + $0x70] sm:$0xff]   ;;  %s2676_s4 = scalar_lea.hbm %s2731_s3, %s1905_s10  ;;  %s1572_s8 = scalar_lea.sflag [#allocation4], %s2396_s7 }
  0x5d   : > { %596 = vmatprep.subr.bf16.mxu0 %v2017_v17  ;;  %789 = vmatprep.subr.bf16.mxu1 %v2019_v18  ;;  %v2056_v48 = vld [vmem:[#allocation2 + $0x78] sm:$0xff]   ;;  %v267_v55 = vld [vmem:[%s233_s20] sm:$0xf]  ;;  %s2139_s9 = scalar_lea.vmem %s2678_s19, 8192  ;;  %p2744_p10 = scmp.ne.s32.totalorder %s2737_s25, 0 }
  0x5e   : > { %v2470_v56 = vrot.slane %v267_v55, %v977_v51  ;;  %v2472_v57 = vrot.slane %v267_v55, %v985_v52  ;;  %v2474_v58 = vrot.slane %v267_v55, %v981_v53  ;;  %v2476_v59 = vrot.slane %v267_v55, %v989_v54  ;;  %p2140_p7 = scmp.ne.s32.totalorder %s2678_s19, %s2139_s9  ;;  %s2234_s11 = smov [#allocation8]  }
  0x5f   : > { %s2143_s21 = sshll.u32 %s2234_s11, 4  ;;  %s2144_s21 = int_to_ptr.vmem [resolvable:$false] %s2143_s21 }
  0x60   : > { %597 = vmatpush1.bf16.msra.mxu0 %v2021_v19  ;;  %790 = vmatpush1.bf16.msra.mxu1 %v2022_v20  ;;  %p2141_p2 = pnand %p2140_p7, %p2744_p10  ;;  %s2145_s30 = scalar_lea.vmem %s2144_s21, 16384 }
  0x61   : > { %598 = vmatprep.subr.bf16.mxu0 %v2023_v21  ;;  %791 = vmatprep.subr.bf16.mxu1 %v2025_v22  ;;  %p2146_p0 = scmp.lt.s32.totalorder %s2678_s19, %s2144_s21  ;;  %p2147_p3 = scmp.lt.s32.totalorder %s2145_s30, %s2139_s9 }
  0x62   : > { %p2142_p1 = pneg %p2141_p2 }
  0x63   : > { %p2148_p4 = por %p2147_p3, %p2146_p0 }
  0x64   : > { %599 = vmatpush1.bf16.msra.mxu0 %v2027_v23  ;;  %792 = vmatpush1.bf16.msra.mxu1 %v2028_v24 }
  0x65   : > { %600 = vmatprep.subr.bf16.mxu0 %v2029_v25  ;;  %793 = vmatprep.subr.bf16.mxu1 %v2031_v26  ;;  %p2149_p6 = pnand %p2148_p4, %p2142_p1 }
  0x68   : > { %601 = vmatpush1.bf16.msra.mxu0 %v2033_v27  ;;  %794 = vmatpush1.bf16.msra.mxu1 %v2034_v28 }
  0x69   : > { %602 = vmatprep.subr.bf16.mxu0 %v2035_v29  ;;  %795 = vmatprep.subr.bf16.mxu1 %v2037_v30 }
  0x6c   : > { %603 = vmatpush1.bf16.msra.mxu0 %v2039_v31  ;;  %796 = vmatpush1.bf16.msra.mxu1 %v2040_v32 }
  0x6f   : > { %621 = vmatmul.mubr.bf16.vlgmr.msra.gmra.mxu0 %v2041_v33  ;;  %814 = vmatmul.mubr.bf16.vlgmr.msra.gmra.mxu1 %v2041_v33 }
  0x70   : > { %630 = vmatprep.mubr.bf16.mxu0 %v2233_v0  ;;  %823 = vmatprep.mubr.bf16.mxu1 %v2233_v0 }
  0x77   : > { %631 = vmatmul.mubr.bf16.gmra.mxu0 %v2042_v34  ;;  %824 = vmatmul.mubr.bf16.gmra.mxu1 %v2042_v34 }
  0x78   : > { %640 = vmatprep.mubr.bf16.mxu0 %v2233_v0  ;;  %833 = vmatprep.mubr.bf16.mxu1 %v2233_v0 }
  0x7f   : > { %641 = vmatmul.mubr.bf16.gmra.mxu0 %v2043_v35  ;;  %834 = vmatmul.mubr.bf16.gmra.mxu1 %v2043_v35 }
  0x80   : > { %650 = vmatprep.mubr.bf16.mxu0 %v2233_v0  ;;  %843 = vmatprep.mubr.bf16.mxu1 %v2233_v0 }
  0x87   : > { %651 = vmatmul.mubr.bf16.gmra.mxu0 %v2044_v36  ;;  %844 = vmatmul.mubr.bf16.gmra.mxu1 %v2044_v36 }
  0x88   : > { %660 = vmatprep.mubr.bf16.mxu0 %v2233_v0  ;;  %853 = vmatprep.mubr.bf16.mxu1 %v2233_v0 }
  0x8f   : > { %661 = vmatmul.mubr.bf16.gmra.mxu0 %v2045_v37  ;;  %854 = vmatmul.mubr.bf16.gmra.mxu1 %v2045_v37 }
  0x90   : > { %670 = vmatprep.mubr.bf16.mxu0 %v2233_v0  ;;  %863 = vmatprep.mubr.bf16.mxu1 %v2233_v0 }
  0x97   : > { %671 = vmatmul.mubr.bf16.gmra.mxu0 %v2046_v38  ;;  %864 = vmatmul.mubr.bf16.gmra.mxu1 %v2046_v38 }
  0x98   : > { %680 = vmatprep.mubr.bf16.mxu0 %v2233_v0  ;;  %873 = vmatprep.mubr.bf16.mxu1 %v2233_v0 }
  0x9f   : > { %681 = vmatmul.mubr.bf16.gmra.mxu0 %v2047_v39  ;;  %874 = vmatmul.mubr.bf16.gmra.mxu1 %v2047_v39 }
  0xa0   : > { %690 = vmatprep.mubr.bf16.mxu0 %v2233_v0  ;;  %883 = vmatprep.mubr.bf16.mxu1 %v2233_v0 }
  0xa7   : > { %691 = vmatmul.mubr.bf16.gmra.mxu0 %v2048_v40  ;;  %884 = vmatmul.mubr.bf16.gmra.mxu1 %v2048_v40 }
  0xa8   : > { %700 = vmatprep.mubr.bf16.mxu0 %v2233_v0  ;;  %893 = vmatprep.mubr.bf16.mxu1 %v2233_v0 }
  0xaf   : > { %701 = vmatmul.mubr.bf16.gmra.mxu0 %v2049_v41  ;;  %894 = vmatmul.mubr.bf16.gmra.mxu1 %v2049_v41 }
  0xb0   : > { %710 = vmatprep.mubr.bf16.mxu0 %v2233_v0  ;;  %903 = vmatprep.mubr.bf16.mxu1 %v2233_v0 }
  0xb7   : > { %711 = vmatmul.mubr.bf16.gmra.mxu0 %v2050_v42  ;;  %904 = vmatmul.mubr.bf16.gmra.mxu1 %v2050_v42 }
  0xb8   : > { %720 = vmatprep.mubr.bf16.mxu0 %v2233_v0  ;;  %913 = vmatprep.mubr.bf16.mxu1 %v2233_v0 }
  0xbf   : > { %721 = vmatmul.mubr.bf16.gmra.mxu0 %v2051_v43  ;;  %914 = vmatmul.mubr.bf16.gmra.mxu1 %v2051_v43 }
  0xc0   : > { %730 = vmatprep.mubr.bf16.mxu0 %v2233_v0  ;;  %923 = vmatprep.mubr.bf16.mxu1 %v2233_v0 }
  0xc7   : > { %731 = vmatmul.mubr.bf16.gmra.mxu0 %v2052_v44  ;;  %924 = vmatmul.mubr.bf16.gmra.mxu1 %v2052_v44 }
  0xc8   : > { %740 = vmatprep.mubr.bf16.mxu0 %v2233_v0  ;;  %933 = vmatprep.mubr.bf16.mxu1 %v2233_v0 }
  0xcf   : > { %741 = vmatmul.mubr.bf16.gmra.mxu0 %v2053_v45  ;;  %934 = vmatmul.mubr.bf16.gmra.mxu1 %v2053_v45 }
  0xd0   : > { %750 = vmatprep.mubr.bf16.mxu0 %v2233_v0  ;;  %943 = vmatprep.mubr.bf16.mxu1 %v2233_v0 }
  0xd7   : > { %751 = vmatmul.mubr.bf16.gmra.mxu0 %v2054_v46  ;;  %944 = vmatmul.mubr.bf16.gmra.mxu1 %v2054_v46 }
  0xd8   : > { %760 = vmatprep.mubr.bf16.mxu0 %v2233_v0  ;;  %953 = vmatprep.mubr.bf16.mxu1 %v2233_v0 }
  0xdf   : > { %761 = vmatmul.mubr.bf16.gmra.mxu0 %v2055_v47  ;;  %954 = vmatmul.mubr.bf16.gmra.mxu1 %v2055_v47 }
  0xe0   : > { %770 = vmatprep.mubr.bf16.mxu0 %v2233_v0  ;;  %963 = vmatprep.mubr.bf16.mxu1 %v2233_v0 }
  0xe7   : > { %771 = vmatmul.mubr.bf16.gmra.mxu0 %v2056_v48  ;;  %964 = vmatmul.mubr.bf16.gmra.mxu1 %v2056_v48 }
 0x12f   : > { %v622_v60 = vpop.f32.mrf.mxu0  ;;  %v815_v61 = vpop.f32.mrf.mxu1 }
 0x130   : > { %v995_v0 = vadd.f32 %v2470_v56, %v622_v60  ;;  %v997_v1 = vadd.f32 %v2472_v57, %v815_v61 }
 0x131   : > { %v624_v62 = vpop.f32.mrf.mxu0  ;;  %v817_v63 = vpop.f32.mrf.mxu1 }
 0x132   : > { %v996_v2 = vadd.f32 %v2474_v58, %v624_v62  ;;  %v998_v3 = vadd.f32 %v2476_v59, %v817_v63 }
 0x133   : > { %v626_v4 = vpop.f32.mrf.mxu0  ;;  %v819_v5 = vpop.f32.mrf.mxu1 }
 0x134   : > { %v1841_v6 = vpack.c.bf16 %v996_v2, %v995_v0  ;;  %v1842_v7 = vpack.c.bf16 %v998_v3, %v997_v1  ;;  %v999_v10 = vadd.f32 %v2470_v56, %v626_v4  ;;  %v1001_v11 = vadd.f32 %v2472_v57, %v819_v5 }
 0x135   : > { %v628_v8 = vpop.f32.mrf.mxu0  ;;  %v821_v9 = vpop.f32.mrf.mxu1 }
 0x136   : > { %1507 = vst [vmem:[%s2483_s27] sm:$0xff] %v1841_v6  ;;  %1508 = vst [vmem:[%s2483_s27 + $0x8] sm:$0xff] %v1842_v7  ;;  %v1000_v12 = vadd.f32 %v2474_v58, %v628_v8  ;;  %v1002_v13 = vadd.f32 %v2476_v59, %v821_v9 }
 0x137   : > { %v632_v14 = vpop.f32.mrf.mxu0  ;;  %v825_v15 = vpop.f32.mrf.mxu1 }
 0x138   : > { %v1843_v16 = vpack.c.bf16 %v1000_v12, %v999_v10  ;;  %v1844_v17 = vpack.c.bf16 %v1002_v13, %v1001_v11  ;;  %v1003_v20 = vadd.f32 %v2470_v56, %v632_v14  ;;  %v1005_v21 = vadd.f32 %v2472_v57, %v825_v15 }
 0x139   : > { %v634_v18 = vpop.f32.mrf.mxu0  ;;  %v827_v19 = vpop.f32.mrf.mxu1 }
 0x13a   : > { %1509 = vst [vmem:[%s2483_s27 + $0x10] sm:$0xff] %v1843_v16  ;;  %1510 = vst [vmem:[%s2483_s27 + $0x18] sm:$0xff] %v1844_v17  ;;  %v1004_v22 = vadd.f32 %v2474_v58, %v634_v18  ;;  %v1006_v23 = vadd.f32 %v2476_v59, %v827_v19 }
 0x13b   : > { %v636_v24 = vpop.f32.mrf.mxu0  ;;  %v829_v25 = vpop.f32.mrf.mxu1 }
 0x13c   : > { %v1845_v26 = vpack.c.bf16 %v1004_v22, %v1003_v20  ;;  %v1846_v27 = vpack.c.bf16 %v1006_v23, %v1005_v21  ;;  %v1007_v30 = vadd.f32 %v2470_v56, %v636_v24  ;;  %v1009_v31 = vadd.f32 %v2472_v57, %v829_v25 }
 0x13d   : > { %v638_v28 = vpop.f32.mrf.mxu0  ;;  %v831_v29 = vpop.f32.mrf.mxu1 }
 0x13e   : > { %1511 = vst [vmem:[%s2483_s27 + $0x20] sm:$0xff] %v1845_v26  ;;  %1512 = vst [vmem:[%s2483_s27 + $0x28] sm:$0xff] %v1846_v27  ;;  %v1008_v32 = vadd.f32 %v2474_v58, %v638_v28  ;;  %v1010_v33 = vadd.f32 %v2476_v59, %v831_v29 }
 0x13f   : > { %v642_v34 = vpop.f32.mrf.mxu0  ;;  %v835_v35 = vpop.f32.mrf.mxu1 }
 0x140   : > { %v1847_v36 = vpack.c.bf16 %v1008_v32, %v1007_v30  ;;  %v1848_v37 = vpack.c.bf16 %v1010_v33, %v1009_v31  ;;  %v1011_v40 = vadd.f32 %v2470_v56, %v642_v34  ;;  %v1013_v41 = vadd.f32 %v2472_v57, %v835_v35 }
 0x141   : > { %v644_v38 = vpop.f32.mrf.mxu0  ;;  %v837_v39 = vpop.f32.mrf.mxu1 }
 0x142   : > { %1513 = vst [vmem:[%s2483_s27 + $0x30] sm:$0xff] %v1847_v36  ;;  %1514 = vst [vmem:[%s2483_s27 + $0x38] sm:$0xff] %v1848_v37  ;;  %v1012_v42 = vadd.f32 %v2474_v58, %v644_v38  ;;  %v1014_v43 = vadd.f32 %v2476_v59, %v837_v39 }
 0x143   : > { %v646_v44 = vpop.f32.mrf.mxu0  ;;  %v839_v45 = vpop.f32.mrf.mxu1 }
 0x144   : > { %v1849_v46 = vpack.c.bf16 %v1012_v42, %v1011_v40  ;;  %v1850_v47 = vpack.c.bf16 %v1014_v43, %v1013_v41  ;;  %v1015_v50 = vadd.f32 %v2470_v56, %v646_v44  ;;  %v1017_v51 = vadd.f32 %v2472_v57, %v839_v45 }
 0x145   : > { %v648_v48 = vpop.f32.mrf.mxu0  ;;  %v841_v49 = vpop.f32.mrf.mxu1 }
 0x146   : > { %1515 = vst [vmem:[%s2483_s27 + $0x40] sm:$0xff] %v1849_v46  ;;  %1516 = vst [vmem:[%s2483_s27 + $0x48] sm:$0xff] %v1850_v47  ;;  %v1016_v52 = vadd.f32 %v2474_v58, %v648_v48  ;;  %v1018_v53 = vadd.f32 %v2476_v59, %v841_v49 }
 0x147   : > { %v652_v54 = vpop.f32.mrf.mxu0  ;;  %v845_v55 = vpop.f32.mrf.mxu1 }
 0x148   : > { %v1851_v60 = vpack.c.bf16 %v1016_v52, %v1015_v50  ;;  %v1852_v61 = vpack.c.bf16 %v1018_v53, %v1017_v51  ;;  %v1019_v0 = vadd.f32 %v2470_v56, %v652_v54  ;;  %v1021_v1 = vadd.f32 %v2472_v57, %v845_v55 }
 0x149   : > { %v654_v62 = vpop.f32.mrf.mxu0  ;;  %v847_v63 = vpop.f32.mrf.mxu1 }
 0x14a   : > { %1517 = vst [vmem:[%s2483_s27 + $0x50] sm:$0xff] %v1851_v60  ;;  %1518 = vst [vmem:[%s2483_s27 + $0x58] sm:$0xff] %v1852_v61  ;;  %v1020_v2 = vadd.f32 %v2474_v58, %v654_v62  ;;  %v1022_v3 = vadd.f32 %v2476_v59, %v847_v63 }
 0x14b   : > { %v656_v4 = vpop.f32.mrf.mxu0  ;;  %v849_v5 = vpop.f32.mrf.mxu1 }
 0x14c   : > { %v1853_v6 = vpack.c.bf16 %v1020_v2, %v1019_v0  ;;  %v1854_v7 = vpack.c.bf16 %v1022_v3, %v1021_v1  ;;  %v1023_v10 = vadd.f32 %v2470_v56, %v656_v4  ;;  %v1025_v11 = vadd.f32 %v2472_v57, %v849_v5 }
 0x14d   : > { %v658_v8 = vpop.f32.mrf.mxu0  ;;  %v851_v9 = vpop.f32.mrf.mxu1 }
 0x14e   : > { %1519 = vst [vmem:[%s2483_s27 + $0x60] sm:$0xff] %v1853_v6  ;;  %1520 = vst [vmem:[%s2483_s27 + $0x68] sm:$0xff] %v1854_v7  ;;  %v1024_v12 = vadd.f32 %v2474_v58, %v658_v8  ;;  %v1026_v13 = vadd.f32 %v2476_v59, %v851_v9 }
 0x14f   : > { %v662_v14 = vpop.f32.mrf.mxu0  ;;  %v855_v15 = vpop.f32.mrf.mxu1 }
 0x150   : > { %v1855_v16 = vpack.c.bf16 %v1024_v12, %v1023_v10  ;;  %v1856_v17 = vpack.c.bf16 %v1026_v13, %v1025_v11  ;;  %v1027_v20 = vadd.f32 %v2470_v56, %v662_v14  ;;  %v1029_v21 = vadd.f32 %v2472_v57, %v855_v15 }
 0x151   : > { %v664_v18 = vpop.f32.mrf.mxu0  ;;  %v857_v19 = vpop.f32.mrf.mxu1 }
 0x152   : > { %1521 = vst [vmem:[%s2483_s27 + $0x70] sm:$0xff] %v1855_v16  ;;  %1522 = vst [vmem:[%s2483_s27 + $0x78] sm:$0xff] %v1856_v17  ;;  %v1028_v22 = vadd.f32 %v2474_v58, %v664_v18  ;;  %v1030_v23 = vadd.f32 %v2476_v59, %v857_v19 }
 0x153   : > { %v666_v24 = vpop.f32.mrf.mxu0  ;;  %v859_v25 = vpop.f32.mrf.mxu1 }
 0x154   : > { %v1857_v26 = vpack.c.bf16 %v1028_v22, %v1027_v20  ;;  %v1858_v27 = vpack.c.bf16 %v1030_v23, %v1029_v21  ;;  %v1031_v30 = vadd.f32 %v2470_v56, %v666_v24  ;;  %v1033_v31 = vadd.f32 %v2472_v57, %v859_v25 }
 0x155   : > { %v668_v28 = vpop.f32.mrf.mxu0  ;;  %v861_v29 = vpop.f32.mrf.mxu1 }
 0x156   : > { %1523 = vst [vmem:[%s2483_s27 + $0x80] sm:$0xff] %v1857_v26  ;;  %1524 = vst [vmem:[%s2483_s27 + $0x88] sm:$0xff] %v1858_v27  ;;  %v1032_v32 = vadd.f32 %v2474_v58, %v668_v28  ;;  %v1034_v33 = vadd.f32 %v2476_v59, %v861_v29 }
 0x157   : > { %v672_v34 = vpop.f32.mrf.mxu0  ;;  %v865_v35 = vpop.f32.mrf.mxu1 }
 0x158   : > { %v1859_v36 = vpack.c.bf16 %v1032_v32, %v1031_v30  ;;  %v1860_v37 = vpack.c.bf16 %v1034_v33, %v1033_v31  ;;  %v1035_v40 = vadd.f32 %v2470_v56, %v672_v34  ;;  %v1037_v41 = vadd.f32 %v2472_v57, %v865_v35 }
 0x159   : > { %v674_v38 = vpop.f32.mrf.mxu0  ;;  %v867_v39 = vpop.f32.mrf.mxu1 }
 0x15a   : > { %1525 = vst [vmem:[%s2483_s27 + $0x90] sm:$0xff] %v1859_v36  ;;  %1526 = vst [vmem:[%s2483_s27 + $0x98] sm:$0xff] %v1860_v37  ;;  %v1036_v42 = vadd.f32 %v2474_v58, %v674_v38  ;;  %v1038_v43 = vadd.f32 %v2476_v59, %v867_v39 }
 0x15b   : > { %v676_v44 = vpop.f32.mrf.mxu0  ;;  %v869_v45 = vpop.f32.mrf.mxu1 }
 0x15c   : > { %v1861_v46 = vpack.c.bf16 %v1036_v42, %v1035_v40  ;;  %v1862_v47 = vpack.c.bf16 %v1038_v43, %v1037_v41  ;;  %v1039_v50 = vadd.f32 %v2470_v56, %v676_v44  ;;  %v1041_v51 = vadd.f32 %v2472_v57, %v869_v45 }
 0x15d   : > { %v678_v48 = vpop.f32.mrf.mxu0  ;;  %v871_v49 = vpop.f32.mrf.mxu1 }
 0x15e   : > { %1527 = vst [vmem:[%s2483_s27 + $0xa0] sm:$0xff] %v1861_v46  ;;  %1528 = vst [vmem:[%s2483_s27 + $0xa8] sm:$0xff] %v1862_v47  ;;  %v1040_v52 = vadd.f32 %v2474_v58, %v678_v48  ;;  %v1042_v53 = vadd.f32 %v2476_v59, %v871_v49 }
 0x15f   : > { %v682_v54 = vpop.f32.mrf.mxu0  ;;  %v875_v55 = vpop.f32.mrf.mxu1 }
 0x160   : > { %v1863_v60 = vpack.c.bf16 %v1040_v52, %v1039_v50  ;;  %v1864_v61 = vpack.c.bf16 %v1042_v53, %v1041_v51  ;;  %v1043_v0 = vadd.f32 %v2470_v56, %v682_v54  ;;  %v1045_v1 = vadd.f32 %v2472_v57, %v875_v55 }
 0x161   : > { %v684_v62 = vpop.f32.mrf.mxu0  ;;  %v877_v63 = vpop.f32.mrf.mxu1 }
 0x162   : > { %1529 = vst [vmem:[%s2483_s27 + $0xb0] sm:$0xff] %v1863_v60  ;;  %1530 = vst [vmem:[%s2483_s27 + $0xb8] sm:$0xff] %v1864_v61  ;;  %v1044_v2 = vadd.f32 %v2474_v58, %v684_v62  ;;  %v1046_v3 = vadd.f32 %v2476_v59, %v877_v63 }
 0x163   : > { %v686_v4 = vpop.f32.mrf.mxu0  ;;  %v879_v5 = vpop.f32.mrf.mxu1 }
 0x164   : > { %v1865_v6 = vpack.c.bf16 %v1044_v2, %v1043_v0  ;;  %v1866_v7 = vpack.c.bf16 %v1046_v3, %v1045_v1  ;;  %v1047_v10 = vadd.f32 %v2470_v56, %v686_v4  ;;  %v1049_v11 = vadd.f32 %v2472_v57, %v879_v5 }
 0x165   : > { %v688_v8 = vpop.f32.mrf.mxu0  ;;  %v881_v9 = vpop.f32.mrf.mxu1 }
 0x166   : > { %1531 = vst [vmem:[%s2483_s27 + $0xc0] sm:$0xff] %v1865_v6  ;;  %1532 = vst [vmem:[%s2483_s27 + $0xc8] sm:$0xff] %v1866_v7  ;;  %v1048_v12 = vadd.f32 %v2474_v58, %v688_v8  ;;  %v1050_v13 = vadd.f32 %v2476_v59, %v881_v9 }
 0x167   : > { %v692_v14 = vpop.f32.mrf.mxu0  ;;  %v885_v15 = vpop.f32.mrf.mxu1 }
 0x168   : > { %v1867_v16 = vpack.c.bf16 %v1048_v12, %v1047_v10  ;;  %v1868_v17 = vpack.c.bf16 %v1050_v13, %v1049_v11  ;;  %v1051_v20 = vadd.f32 %v2470_v56, %v692_v14  ;;  %v1053_v21 = vadd.f32 %v2472_v57, %v885_v15 }
 0x169   : > { %v694_v18 = vpop.f32.mrf.mxu0  ;;  %v887_v19 = vpop.f32.mrf.mxu1 }
 0x16a   : > { %1533 = vst [vmem:[%s2483_s27 + $0xd0] sm:$0xff] %v1867_v16  ;;  %1534 = vst [vmem:[%s2483_s27 + $0xd8] sm:$0xff] %v1868_v17  ;;  %v1052_v22 = vadd.f32 %v2474_v58, %v694_v18  ;;  %v1054_v23 = vadd.f32 %v2476_v59, %v887_v19 }
 0x16b   : > { %v696_v24 = vpop.f32.mrf.mxu0  ;;  %v889_v25 = vpop.f32.mrf.mxu1 }
 0x16c   : > { %v1869_v26 = vpack.c.bf16 %v1052_v22, %v1051_v20  ;;  %v1870_v27 = vpack.c.bf16 %v1054_v23, %v1053_v21  ;;  %v1055_v30 = vadd.f32 %v2470_v56, %v696_v24  ;;  %v1057_v31 = vadd.f32 %v2472_v57, %v889_v25 }
 0x16d   : > { %v698_v28 = vpop.f32.mrf.mxu0  ;;  %v891_v29 = vpop.f32.mrf.mxu1 }
 0x16e   : > { %1535 = vst [vmem:[%s2483_s27 + $0xe0] sm:$0xff] %v1869_v26  ;;  %1536 = vst [vmem:[%s2483_s27 + $0xe8] sm:$0xff] %v1870_v27  ;;  %v1056_v32 = vadd.f32 %v2474_v58, %v698_v28  ;;  %v1058_v33 = vadd.f32 %v2476_v59, %v891_v29 }
 0x16f   : > { %v702_v34 = vpop.f32.mrf.mxu0  ;;  %v895_v35 = vpop.f32.mrf.mxu1 }
 0x170   : > { %v1871_v36 = vpack.c.bf16 %v1056_v32, %v1055_v30  ;;  %v1872_v37 = vpack.c.bf16 %v1058_v33, %v1057_v31  ;;  %v1059_v40 = vadd.f32 %v2470_v56, %v702_v34  ;;  %v1061_v41 = vadd.f32 %v2472_v57, %v895_v35 }
 0x171   : > { %v704_v38 = vpop.f32.mrf.mxu0  ;;  %v897_v39 = vpop.f32.mrf.mxu1 }
 0x172   : > { %1537 = vst [vmem:[%s2483_s27 + $0xf0] sm:$0xff] %v1871_v36  ;;  %1538 = vst [vmem:[%s2483_s27 + $0xf8] sm:$0xff] %v1872_v37  ;;  %v1060_v42 = vadd.f32 %v2474_v58, %v704_v38  ;;  %v1062_v43 = vadd.f32 %v2476_v59, %v897_v39 }
 0x173   : > { %v706_v44 = vpop.f32.mrf.mxu0  ;;  %v899_v45 = vpop.f32.mrf.mxu1 }
 0x174   : > { %v1873_v46 = vpack.c.bf16 %v1060_v42, %v1059_v40  ;;  %v1874_v47 = vpack.c.bf16 %v1062_v43, %v1061_v41  ;;  %v1063_v50 = vadd.f32 %v2470_v56, %v706_v44  ;;  %v1065_v51 = vadd.f32 %v2472_v57, %v899_v45 }
 0x175   : > { %v708_v48 = vpop.f32.mrf.mxu0  ;;  %v901_v49 = vpop.f32.mrf.mxu1 }
 0x176   : > { %1539 = vst [vmem:[%s2483_s27 + $0x100] sm:$0xff] %v1873_v46  ;;  %1540 = vst [vmem:[%s2483_s27 + $0x108] sm:$0xff] %v1874_v47  ;;  %v1064_v52 = vadd.f32 %v2474_v58, %v708_v48  ;;  %v1066_v53 = vadd.f32 %v2476_v59, %v901_v49 }
 0x177   : > { %v712_v54 = vpop.f32.mrf.mxu0  ;;  %v905_v55 = vpop.f32.mrf.mxu1 }
 0x178   : > { %v1875_v60 = vpack.c.bf16 %v1064_v52, %v1063_v50  ;;  %v1876_v61 = vpack.c.bf16 %v1066_v53, %v1065_v51  ;;  %v1067_v0 = vadd.f32 %v2470_v56, %v712_v54  ;;  %v1069_v1 = vadd.f32 %v2472_v57, %v905_v55 }
 0x179   : > { %v714_v62 = vpop.f32.mrf.mxu0  ;;  %v907_v63 = vpop.f32.mrf.mxu1 }
 0x17a   : > { %1541 = vst [vmem:[%s2483_s27 + $0x110] sm:$0xff] %v1875_v60  ;;  %1542 = vst [vmem:[%s2483_s27 + $0x118] sm:$0xff] %v1876_v61  ;;  %v1068_v2 = vadd.f32 %v2474_v58, %v714_v62  ;;  %v1070_v3 = vadd.f32 %v2476_v59, %v907_v63 }
 0x17b   : > { %v716_v4 = vpop.f32.mrf.mxu0  ;;  %v909_v5 = vpop.f32.mrf.mxu1 }
 0x17c   : > { %v1877_v6 = vpack.c.bf16 %v1068_v2, %v1067_v0  ;;  %v1878_v7 = vpack.c.bf16 %v1070_v3, %v1069_v1  ;;  %v1071_v10 = vadd.f32 %v2470_v56, %v716_v4  ;;  %v1073_v11 = vadd.f32 %v2472_v57, %v909_v5 }
 0x17d   : > { %v718_v8 = vpop.f32.mrf.mxu0  ;;  %v911_v9 = vpop.f32.mrf.mxu1 }
 0x17e   : > { %1543 = vst [vmem:[%s2483_s27 + $0x120] sm:$0xff] %v1877_v6  ;;  %1544 = vst [vmem:[%s2483_s27 + $0x128] sm:$0xff] %v1878_v7  ;;  %v1072_v12 = vadd.f32 %v2474_v58, %v718_v8  ;;  %v1074_v13 = vadd.f32 %v2476_v59, %v911_v9 }
 0x17f   : > { %v722_v14 = vpop.f32.mrf.mxu0  ;;  %v915_v15 = vpop.f32.mrf.mxu1 }
 0x180   : > { %v1879_v16 = vpack.c.bf16 %v1072_v12, %v1071_v10  ;;  %v1880_v17 = vpack.c.bf16 %v1074_v13, %v1073_v11  ;;  %v1075_v20 = vadd.f32 %v2470_v56, %v722_v14  ;;  %v1077_v21 = vadd.f32 %v2472_v57, %v915_v15 }
 0x181   : > { %v724_v18 = vpop.f32.mrf.mxu0  ;;  %v917_v19 = vpop.f32.mrf.mxu1 }
 0x182   : > { %1545 = vst [vmem:[%s2483_s27 + $0x130] sm:$0xff] %v1879_v16  ;;  %1546 = vst [vmem:[%s2483_s27 + $0x138] sm:$0xff] %v1880_v17  ;;  %v1076_v22 = vadd.f32 %v2474_v58, %v724_v18  ;;  %v1078_v23 = vadd.f32 %v2476_v59, %v917_v19 }
 0x183   : > { %v726_v24 = vpop.f32.mrf.mxu0  ;;  %v919_v25 = vpop.f32.mrf.mxu1 }
 0x184   : > { %v1881_v26 = vpack.c.bf16 %v1076_v22, %v1075_v20  ;;  %v1882_v27 = vpack.c.bf16 %v1078_v23, %v1077_v21  ;;  %v1079_v30 = vadd.f32 %v2470_v56, %v726_v24  ;;  %v1081_v31 = vadd.f32 %v2472_v57, %v919_v25 }
 0x185   : > { %v728_v28 = vpop.f32.mrf.mxu0  ;;  %v921_v29 = vpop.f32.mrf.mxu1 }
 0x186   : > { %1547 = vst [vmem:[%s2483_s27 + $0x140] sm:$0xff] %v1881_v26  ;;  %1548 = vst [vmem:[%s2483_s27 + $0x148] sm:$0xff] %v1882_v27  ;;  %v1080_v32 = vadd.f32 %v2474_v58, %v728_v28  ;;  %v1082_v33 = vadd.f32 %v2476_v59, %v921_v29 }
 0x187   : > { %v732_v34 = vpop.f32.mrf.mxu0  ;;  %v925_v35 = vpop.f32.mrf.mxu1 }
 0x188   : > { %v1883_v36 = vpack.c.bf16 %v1080_v32, %v1079_v30  ;;  %v1884_v37 = vpack.c.bf16 %v1082_v33, %v1081_v31  ;;  %v1083_v40 = vadd.f32 %v2470_v56, %v732_v34  ;;  %v1085_v41 = vadd.f32 %v2472_v57, %v925_v35 }
 0x189   : > { %v734_v38 = vpop.f32.mrf.mxu0  ;;  %v927_v39 = vpop.f32.mrf.mxu1 }
 0x18a   : > { %1549 = vst [vmem:[%s2483_s27 + $0x150] sm:$0xff] %v1883_v36  ;;  %1550 = vst [vmem:[%s2483_s27 + $0x158] sm:$0xff] %v1884_v37  ;;  %v1084_v42 = vadd.f32 %v2474_v58, %v734_v38  ;;  %v1086_v43 = vadd.f32 %v2476_v59, %v927_v39 }
 0x18b   : > { %v736_v44 = vpop.f32.mrf.mxu0  ;;  %v929_v45 = vpop.f32.mrf.mxu1 }
 0x18c   : > { %v1885_v46 = vpack.c.bf16 %v1084_v42, %v1083_v40  ;;  %v1886_v47 = vpack.c.bf16 %v1086_v43, %v1085_v41  ;;  %v1087_v50 = vadd.f32 %v2470_v56, %v736_v44  ;;  %v1089_v51 = vadd.f32 %v2472_v57, %v929_v45 }
 0x18d   : > { %v738_v48 = vpop.f32.mrf.mxu0  ;;  %v931_v49 = vpop.f32.mrf.mxu1 }
 0x18e   : > { %1551 = vst [vmem:[%s2483_s27 + $0x160] sm:$0xff] %v1885_v46  ;;  %1552 = vst [vmem:[%s2483_s27 + $0x168] sm:$0xff] %v1886_v47  ;;  %v1088_v52 = vadd.f32 %v2474_v58, %v738_v48  ;;  %v1090_v53 = vadd.f32 %v2476_v59, %v931_v49 }
 0x18f   : > { %v742_v54 = vpop.f32.mrf.mxu0  ;;  %v935_v55 = vpop.f32.mrf.mxu1 }
 0x190   : > { %v1887_v60 = vpack.c.bf16 %v1088_v52, %v1087_v50  ;;  %v1888_v61 = vpack.c.bf16 %v1090_v53, %v1089_v51  ;;  %v1091_v0 = vadd.f32 %v2470_v56, %v742_v54  ;;  %v1093_v1 = vadd.f32 %v2472_v57, %v935_v55 }
 0x191   : > { %v744_v62 = vpop.f32.mrf.mxu0  ;;  %v937_v63 = vpop.f32.mrf.mxu1 }
 0x192   : > { %1553 = vst [vmem:[%s2483_s27 + $0x170] sm:$0xff] %v1887_v60  ;;  %1554 = vst [vmem:[%s2483_s27 + $0x178] sm:$0xff] %v1888_v61  ;;  %v1092_v2 = vadd.f32 %v2474_v58, %v744_v62  ;;  %v1094_v3 = vadd.f32 %v2476_v59, %v937_v63 }
 0x193   : > { %v746_v4 = vpop.f32.mrf.mxu0  ;;  %v939_v5 = vpop.f32.mrf.mxu1 }
 0x194   : > { %v1889_v6 = vpack.c.bf16 %v1092_v2, %v1091_v0  ;;  %v1890_v7 = vpack.c.bf16 %v1094_v3, %v1093_v1  ;;  %v1095_v10 = vadd.f32 %v2470_v56, %v746_v4  ;;  %v1097_v11 = vadd.f32 %v2472_v57, %v939_v5 }
 0x195   : > { %v748_v8 = vpop.f32.mrf.mxu0  ;;  %v941_v9 = vpop.f32.mrf.mxu1 }
 0x196   : > { %1555 = vst [vmem:[%s2483_s27 + $0x180] sm:$0xff] %v1889_v6  ;;  %1556 = vst [vmem:[%s2483_s27 + $0x188] sm:$0xff] %v1890_v7  ;;  %v1096_v12 = vadd.f32 %v2474_v58, %v748_v8  ;;  %v1098_v13 = vadd.f32 %v2476_v59, %v941_v9 }
 0x197   : > { %v752_v14 = vpop.f32.mrf.mxu0  ;;  %v945_v15 = vpop.f32.mrf.mxu1 }
 0x198   : > { %v1891_v16 = vpack.c.bf16 %v1096_v12, %v1095_v10  ;;  %v1892_v17 = vpack.c.bf16 %v1098_v13, %v1097_v11  ;;  %v1099_v20 = vadd.f32 %v2470_v56, %v752_v14  ;;  %v1101_v21 = vadd.f32 %v2472_v57, %v945_v15 }
 0x199   : > { %v754_v18 = vpop.f32.mrf.mxu0  ;;  %v947_v19 = vpop.f32.mrf.mxu1 }
 0x19a   : > { %1557 = vst [vmem:[%s2483_s27 + $0x190] sm:$0xff] %v1891_v16  ;;  %1558 = vst [vmem:[%s2483_s27 + $0x198] sm:$0xff] %v1892_v17  ;;  %v1100_v22 = vadd.f32 %v2474_v58, %v754_v18  ;;  %v1102_v23 = vadd.f32 %v2476_v59, %v947_v19 }
 0x19b   : > { %v756_v24 = vpop.f32.mrf.mxu0  ;;  %v949_v25 = vpop.f32.mrf.mxu1 }
 0x19c   : > { %v1893_v26 = vpack.c.bf16 %v1100_v22, %v1099_v20  ;;  %v1894_v27 = vpack.c.bf16 %v1102_v23, %v1101_v21  ;;  %v1103_v30 = vadd.f32 %v2470_v56, %v756_v24  ;;  %v1105_v31 = vadd.f32 %v2472_v57, %v949_v25 }
 0x19d   : > { %v758_v28 = vpop.f32.mrf.mxu0  ;;  %v951_v29 = vpop.f32.mrf.mxu1 }
 0x19e   : > { %1559 = vst [vmem:[%s2483_s27 + $0x1a0] sm:$0xff] %v1893_v26  ;;  %1560 = vst [vmem:[%s2483_s27 + $0x1a8] sm:$0xff] %v1894_v27  ;;  %v1104_v32 = vadd.f32 %v2474_v58, %v758_v28  ;;  %v1106_v33 = vadd.f32 %v2476_v59, %v951_v29 }
 0x19f   : > { %v762_v34 = vpop.f32.mrf.mxu0  ;;  %v955_v35 = vpop.f32.mrf.mxu1 }
 0x1a0   : > { %v1895_v36 = vpack.c.bf16 %v1104_v32, %v1103_v30  ;;  %v1896_v37 = vpack.c.bf16 %v1106_v33, %v1105_v31  ;;  %v1107_v40 = vadd.f32 %v2470_v56, %v762_v34  ;;  %v1109_v41 = vadd.f32 %v2472_v57, %v955_v35 }
 0x1a1   : > { %v764_v38 = vpop.f32.mrf.mxu0  ;;  %v957_v39 = vpop.f32.mrf.mxu1 }
 0x1a2   : > { %1561 = vst [vmem:[%s2483_s27 + $0x1b0] sm:$0xff] %v1895_v36  ;;  %1562 = vst [vmem:[%s2483_s27 + $0x1b8] sm:$0xff] %v1896_v37  ;;  %v1108_v42 = vadd.f32 %v2474_v58, %v764_v38  ;;  %v1110_v43 = vadd.f32 %v2476_v59, %v957_v39 }
 0x1a3   : > { %v766_v44 = vpop.f32.mrf.mxu0  ;;  %v959_v45 = vpop.f32.mrf.mxu1 }
 0x1a4   : > { %v1897_v46 = vpack.c.bf16 %v1108_v42, %v1107_v40  ;;  %v1898_v47 = vpack.c.bf16 %v1110_v43, %v1109_v41  ;;  %v1111_v50 = vadd.f32 %v2470_v56, %v766_v44  ;;  %v1113_v51 = vadd.f32 %v2472_v57, %v959_v45 }
 0x1a5   : > { %v768_v48 = vpop.f32.mrf.mxu0  ;;  %v961_v49 = vpop.f32.mrf.mxu1 }
 0x1a6   : > { %1563 = vst [vmem:[%s2483_s27 + $0x1c0] sm:$0xff] %v1897_v46  ;;  %1564 = vst [vmem:[%s2483_s27 + $0x1c8] sm:$0xff] %v1898_v47  ;;  %v1112_v52 = vadd.f32 %v2474_v58, %v768_v48  ;;  %v1114_v53 = vadd.f32 %v2476_v59, %v961_v49 }
 0x1a7   : > { %v772_v54 = vpop.f32.mrf.mxu0  ;;  %v965_v55 = vpop.f32.mrf.mxu1 }
 0x1a8   : > { %v1899_v60 = vpack.c.bf16 %v1112_v52, %v1111_v50  ;;  %v1900_v61 = vpack.c.bf16 %v1114_v53, %v1113_v51  ;;  %v1115_v0 = vadd.f32 %v2470_v56, %v772_v54  ;;  %v1117_v1 = vadd.f32 %v2472_v57, %v965_v55 }
 0x1a9   : > { %v774_v62 = vpop.f32.mrf.mxu0  ;;  %v967_v63 = vpop.f32.mrf.mxu1 }
 0x1aa   : > { %1565 = vst [vmem:[%s2483_s27 + $0x1d0] sm:$0xff] %v1899_v60  ;;  %1566 = vst [vmem:[%s2483_s27 + $0x1d8] sm:$0xff] %v1900_v61  ;;  %v1116_v2 = vadd.f32 %v2474_v58, %v774_v62  ;;  %v1118_v3 = vadd.f32 %v2476_v59, %v967_v63 }
 0x1ab   : > { %v776_v4 = vpop.f32.mrf.mxu0  ;;  %v969_v5 = vpop.f32.mrf.mxu1 }
 0x1ac   : > { %v1901_v6 = vpack.c.bf16 %v1116_v2, %v1115_v0  ;;  %v1902_v7 = vpack.c.bf16 %v1118_v3, %v1117_v1  ;;  %v1119_v10 = vadd.f32 %v2470_v56, %v776_v4  ;;  %v1121_v11 = vadd.f32 %v2472_v57, %v969_v5 }
 0x1ad   : > { %v778_v8 = vpop.f32.mrf.mxu0  ;;  %v971_v9 = vpop.f32.mrf.mxu1 }
 0x1ae   : > { %1567 = vst [vmem:[%s2483_s27 + $0x1e0] sm:$0xff] %v1901_v6  ;;  %1568 = vst [vmem:[%s2483_s27 + $0x1e8] sm:$0xff] %v1902_v7  ;;  %v1120_v12 = vadd.f32 %v2474_v58, %v778_v8  ;;  %v1122_v13 = vadd.f32 %v2476_v59, %v971_v9 }
 0x1b0   : > { %v1903_v14 = vpack.c.bf16 %v1120_v12, %v1119_v10  ;;  %v1904_v15 = vpack.c.bf16 %v1122_v13, %v1121_v11 }
 0x1b2   : > { %1569 = vst [vmem:[%s2483_s27 + $0x1f0] sm:$0xff] %v1903_v14  ;;  %1570 = vst [vmem:[%s2483_s27 + $0x1f8] sm:$0xff] %v1904_v15 }
 0x1b3   : > { %2152 = shalt.err (!%p2149_p6)
}
 0x1b4   : > { %s2153_s29 = scalar_lea.hbm %s2676_s4, 8192  ;;  %s2157_s5 = scalar_lea.hbm %s2731_s3, 16384 }
 0x1b5   : > { %p2154_p8 = scmp.ne.s32.totalorder %s2676_s4, %s2153_s29  ;;  %p2158_p11 = scmp.lt.s32.totalorder %s2676_s4, %s2731_s3 }
 0x1b6   : > { %p2159_p12 = scmp.lt.s32.totalorder %s2157_s5, %s2153_s29 }
 0x1b7   : > { %p2155_p5 = pnand %p2154_p8, %p2744_p10 }
 0x1b8   : > { %p2160_p13 = por %p2159_p12, %p2158_p11 }
 0x1b9   : > { %p2156_p9 = pneg %p2155_p5 }
 0x1bb   : > { %p2161_p7 = pnand %p2160_p13, %p2156_p9 }
 0x1bd   : > { %2164 = shalt.err (!%p2161_p7)
}
 0x1be   : > { %s2235_s27 = smov 256   ;;  %s2236_s10 = smov 512  }
 0x1bf   : > { %s2237_s15 = smov 16  }
 0x1c0   : > { %1914 = dma.vmem_to_hbm [thread:$0]  (%p2744_p10), %s2678_s19, 8192, %s2676_s4, %s1572_s8, %s2235_s27, %s2236_s10, %s2237_s15  }
 0x1c1 PF: > { %s1603_s6 = sand.u32 1, %s2203_s12   ;;  %p2745_p2 = scmp.ne.s32.totalorder %s2738_s26, 0 }
 0x1c2   : > { %p2746_p1 = scmp.ge.s32.totalorder %s2223_s17, 2  ;;  %s1604_s9 = scalar_lea.sflag [#allocation4], %s1603_s6 }
 0x1c4   : > { %p1928_p0 = pnand %p2746_p1, %p2745_p2 }
 0x1c6   : > { %p1929_p3 = pneg %p1928_p0 }
 0x1c8   : > { %2198 = dma.done.wait (%p1929_p3), %s1604_s9, 8192  }
 0x1c9   : > { %2200 = vsyncadd (%p1929_p3), %s1604_s9, 4294959104  ;;  %s20_s17 = sadd.s32 1, %s2223_s17   ;;  %s2747_s12 = smov %s2207_s13 }
 0x1ca   : > { %p17_p4 = scmp.ge.s32.totalorder %s20_s17, 4   ;;  %s2748_s13 = smov %s2211_s14 }
 0x1cb   : > { %s2749_s14 = smov %s2306_s24  ;;  %s2750_s15 = smov %s2219_s16 }
 0x1cc   : > { %s2751_s16 = smov %s2753_s18  ;;  %19 = sbr.rel (!%p17_p4) target bundleno = 7 (0x7), region = 94 }
 0x1d1   :  { %1609 = vsyncpa [#allocation3], 1 }
 0x1d2   :  { %1611 = vsyncpa [#allocation3 + $0x1], 1 }
 0x1d3   :  { %1612 = vsyncpa [#allocation6], 1 }
 0x1d4   :  { %1614 = vsyncpa [#allocation6 + $0x1], 1 }
 0x1d5   :  { %1615 = vsyncpa [#allocation4], 1 }
 0x1d6   :  { %1617 = vsyncpa [#allocation4 + $0x1], 1 }

</bundles_post_ra>
